<compile_context>
chip_gen: v6e
topology: v6e:2x2x1
jax: 0.10.0
libtpu: 0.0.40
codegen_flags: <defaults>
</compile_context>

<pallas_src>
import functools

import numpy as np
import jax
import jax.numpy as jnp
from jax.experimental import pallas as pl
from jax.experimental.pallas import tpu as pltpu


# ----------------------------------------------------------------------------
# Pallas kernel: diffusion mix + model forward + MSE loss, whole batch in one
# single-block invocation (no grid; ~24 KB of data, overhead/latency bound).
# ----------------------------------------------------------------------------
def diffusion_trainer_kernel(
    B, C,           # static (bound via functools.partial)
    t_ref,          # SMEM (B,)        int32 timesteps
    coef_ref,       # SMEM (2*T,)      f32 packed [sab_0, somab_0, sab_1, ...]
    x0_ref,         # VMEM (B*C, S)    f32
    noise_ref,      # VMEM (B*C, S)    f32
    p1_ref,         # VMEM (B*Hd, B*C+1)  [ block-diag(w1^T) | temb(+b1) col ]
    p2_ref,         # VMEM (B*C, B*Hd+1)  [ block-diag(w2^T) | b2 col ]
    loss_ref,       # VMEM (B*C, S)    f32 output
):
    BC, _ = x0_ref.shape
    BHd = p1_ref.shape[0]

    # ---- per-row diffusion coefficients, gathered in-kernel from SMEM ------
    # Builds (B*C, 1) columns so the mix below is a full-sublane dense VPU op.
    row = jax.lax.broadcasted_iota(jnp.int32, (BC, 1), 0)
    sab_col = jnp.zeros((BC, 1), jnp.float32)
    somab_col = jnp.zeros((BC, 1), jnp.float32)
    for b in range(B):                       # B is tiny & static
        tb = t_ref[b]
        in_b = (row >= b * C) & (row < (b + 1) * C)
        sab_col = jnp.where(in_b, coef_ref[2 * tb], sab_col)
        somab_col = jnp.where(in_b, coef_ref[2 * tb + 1], somab_col)

    # ---- x_t = sqrt(ab[t]) * x0 + sqrt(1 - ab[t]) * noise  (dense (8,256)) --
    noise = noise_ref[...]
    x_t = sab_col * x0_ref[...] + somab_col * noise          # (B*C, S)

    # ---- layer 1: one block-diagonal dot over the whole batch --------------
    w1 = p1_ref[:, :BC]                                       # (B*Hd, B*C)
    temb = p1_ref[:, BC:BC + 1]                               # (B*Hd, 1), b1 folded in
    h = jnp.dot(w1, x_t, preferred_element_type=jnp.float32,
                precision=jax.lax.Precision.HIGHEST) + temb   # (B*Hd, S)
    h = h * jax.nn.sigmoid(h)                                 # SiLU (EUP)

    # ---- layer 2: one block-diagonal dot, lands in the store layout --------
    w2 = p2_ref[:, :BHd]                                      # (B*C, B*Hd)
    b2 = p2_ref[:, BHd:BHd + 1]                               # (B*C, 1)
    pred = jnp.dot(w2, h, preferred_element_type=jnp.float32,
                   precision=jax.lax.Precision.HIGHEST) + b2  # (B*C, S)

    # ---- mse_loss(..., reduction='none'): dense, unmasked lane-dense store -
    diff = pred - noise
    loss_ref[...] = diff * diff


# ----------------------------------------------------------------------------
# Wrapper
# ----------------------------------------------------------------------------
def gaussian_diffusion_trainer_forward(x0_nchw, t, noise_nchw, params,
                                       coef_table):
    B, C, H, W = x0_nchw.shape
    S = H * W
    Hd = params["w1"].shape[1]

    # Native NCHW layout flattened to (B*C, S): pure reshape, no transpose.
    x0 = x0_nchw.reshape(B * C, S)
    noise = noise_nchw.reshape(B * C, S)

    # Block-diagonal pre-transposed weights: one dot per layer for the whole
    # batch.  Tiny (64x8 / 8x64) matrices; built on the wrapper side.
    eye_b = jnp.eye(B, dtype=jnp.float32)
    w1bd = jnp.kron(eye_b, params["w1"].T)                    # (B*Hd, B*C)
    w2bd = jnp.kron(eye_b, params["w2"].T)                    # (B*C, B*Hd)

    # Time embedding per batch element with b1 folded in, as a (B*Hd, 1)
    # column (broadcasts over the lane/spatial axis in-kernel).
    temb_col = (params["temb_table"][t]
                + params["b1"].reshape(1, Hd)).reshape(B * Hd, 1)
    b2_col = jnp.tile(params["b2"].reshape(1, C), (B, 1)).reshape(B * C, 1)

    # Pack the tiny param operands into two VMEM slabs (fewer DMA descriptors).
    p1 = jnp.concatenate([w1bd, temb_col], axis=1)            # (B*Hd, B*C+1)
    p2 = jnp.concatenate([w2bd, b2_col], axis=1)              # (B*C, B*Hd+1)

    kernel = functools.partial(diffusion_trainer_kernel, B, C)

    loss = pl.pallas_call(
        kernel,
        out_shape=jax.ShapeDtypeStruct((B * C, S), jnp.float32),
        in_specs=[
            pl.BlockSpec(memory_space=pltpu.MemorySpace.SMEM),   # t
            pl.BlockSpec(memory_space=pltpu.MemorySpace.SMEM),   # coef table
            pl.BlockSpec(memory_space=pltpu.MemorySpace.VMEM),   # x0
            pl.BlockSpec(memory_space=pltpu.MemorySpace.VMEM),   # noise
            pl.BlockSpec(memory_space=pltpu.MemorySpace.VMEM),   # p1
            pl.BlockSpec(memory_space=pltpu.MemorySpace.VMEM),   # p2
        ],
        out_specs=pl.BlockSpec(memory_space=pltpu.MemorySpace.VMEM),
    )(t.astype(jnp.int32), coef_table, x0, noise, p1, p2)

    # (B*C, S) -> NCHW, pure reshape.
    return loss.reshape(B, C, H, W)


# pure-JAX reference for a sanity check (f32 precision to match the kernel)
def reference_forward(x0_nchw, t, noise_nchw, params,
                      sqrt_alphas_bar, sqrt_1m_alphas_bar):
    B = x0_nchw.shape[0]
    hi = jax.lax.Precision.HIGHEST
    sab = sqrt_alphas_bar[t].astype(jnp.float32).reshape(B, 1, 1, 1)
    somab = sqrt_1m_alphas_bar[t].astype(jnp.float32).reshape(B, 1, 1, 1)
    x_t = sab * x0_nchw + somab * noise_nchw
    x = jnp.transpose(x_t, (0, 2, 3, 1))                       # (B,H,W,C)
    h = jnp.einsum("bhwc,cd->bhwd", x, params["w1"], precision=hi) + params["b1"]
    h = h + params["temb_table"][t][:, None, None, :]
    h = h * jax.nn.sigmoid(h)
    pred = jnp.einsum("bhwd,dc->bhwc", h, params["w2"], precision=hi) + params["b2"]
    pred = jnp.transpose(pred, (0, 3, 1, 2))                   # NCHW
    return (pred - noise_nchw) ** 2


if __name__ == "__main__":
    # ---- diffusion schedule (matches torch.linspace(...).double() path) ----
    beta_1, beta_T, T = 1e-4, 0.02, 100
    betas64 = np.linspace(beta_1, beta_T, T, dtype=np.float64)
    alphas_bar64 = np.cumprod(1.0 - betas64)
    sqrt_alphas_bar_np = np.sqrt(alphas_bar64)
    sqrt_1m_alphas_bar_np = np.sqrt(1.0 - alphas_bar64)

    sqrt_alphas_bar = jnp.asarray(sqrt_alphas_bar_np, dtype=jnp.float32)
    sqrt_1m_alphas_bar = jnp.asarray(sqrt_1m_alphas_bar_np, dtype=jnp.float32)
    # Packed (2*T,) schedule table for in-kernel SMEM gathers
    # (like the module's register_buffer: built once, float() on use).
    coef_table = jnp.asarray(
        np.stack([sqrt_alphas_bar_np, sqrt_1m_alphas_bar_np],
                 axis=1).reshape(-1), dtype=jnp.float32)

    # ---- shapes ----
    B, C, H, W = 2, 4, 16, 16
    Hd = 32

    # ---- deterministic synthetic model parameters ----
    kp = jax.random.split(jax.random.PRNGKey(0), 6)
    params = {
        "w1": (jax.random.normal(kp[0], (C, Hd), jnp.float32) * 0.2),
        "b1": jnp.zeros((1, Hd), jnp.float32),
        "w2": (jax.random.normal(kp[1], (Hd, C), jnp.float32) * 0.2),
        "b2": jnp.zeros((1, C), jnp.float32),
        "temb_table": (jax.random.normal(kp[2], (T, Hd), jnp.float32) * 0.1),
    }

    # ---- forward randomness (plain JAX, like torch.randint / torch.randn) --
    x0 = jax.random.normal(kp[3], (B, C, H, W), jnp.float32)
    t = jax.random.randint(kp[4], (B,), 0, T)
    noise = jax.random.normal(kp[5], (B, C, H, W), jnp.float32)

    fwd = jax.jit(gaussian_diffusion_trainer_forward)
    loss = fwd(x0, t, noise, params, coef_table)
    loss = jax.block_until_ready(loss)

    ref = reference_forward(
        x0, t, noise, params, sqrt_alphas_bar, sqrt_1m_alphas_bar)
    assert loss.shape == (B, C, H, W)
    np.testing.assert_allclose(np.asarray(loss), np.asarray(ref),
                               rtol=1e-4, atol=1e-4)

    print("KERNEL_OK")
</pallas_src>

<mosaic_0001>
module attributes {stable_mosaic.version = 11 : i64} {
  func.func @diffusion_trainer_kernel(%arg0: memref<2xi32, #tpu.memory_space<smem>>, %arg1: memref<200xf32, #tpu.memory_space<smem>>, %arg2: memref<8x256xf32, #tpu.memory_space<vmem>>, %arg3: memref<8x256xf32, #tpu.memory_space<vmem>>, %arg4: memref<64x9xf32, #tpu.memory_space<vmem>>, %arg5: memref<8x65xf32, #tpu.memory_space<vmem>>, %arg6: memref<8x256xf32, #tpu.memory_space<vmem>>) attributes {dimension_semantics = [], scalar_prefetch = 0 : i64, scratch_operands = 0 : i64, tpu.core_type = #tpu.core_type<tc>} {
    %0 = tpu.iota {dimensions = array<i32: 0>} : vector<8x1xi32>
    %cst = arith.constant 0.000000e+00 : f32
    %1 = vector.broadcast %cst : f32 to vector<8x1xf32>
    %cst_0 = arith.constant 0.000000e+00 : f32
    %2 = vector.broadcast %cst_0 : f32 to vector<8x1xf32>
    %c0 = arith.constant 0 : index
    %3 = memref.load %arg0[%c0] : memref<2xi32, #tpu.memory_space<smem>>
    %c0_i32 = arith.constant 0 : i32
    %4 = vector.broadcast %c0_i32 : i32 to vector<8x1xi32>
    %5 = arith.cmpi sge, %0, %4 : vector<8x1xi32>
    %c4_i32 = arith.constant 4 : i32
    %6 = vector.broadcast %c4_i32 : i32 to vector<8x1xi32>
    %7 = arith.cmpi slt, %0, %6 : vector<8x1xi32>
    %8 = arith.andi %5, %7 : vector<8x1xi1>
    %c2_i32 = arith.constant 2 : i32
    %9 = arith.muli %c2_i32, %3 : i32
    %10 = arith.index_cast %9 : i32 to index
    %11 = memref.load %arg1[%10] : memref<200xf32, #tpu.memory_space<smem>>
    %12 = vector.broadcast %11 : f32 to vector<8x1xf32>
    %13 = arith.select %8, %12, %1 : vector<8x1xi1>, vector<8x1xf32>
    %c2_i32_1 = arith.constant 2 : i32
    %14 = arith.muli %c2_i32_1, %3 : i32
    %c1_i32 = arith.constant 1 : i32
    %15 = arith.addi %14, %c1_i32 : i32
    %16 = arith.index_cast %15 : i32 to index
    %17 = memref.load %arg1[%16] : memref<200xf32, #tpu.memory_space<smem>>
    %18 = vector.broadcast %17 : f32 to vector<8x1xf32>
    %19 = arith.select %8, %18, %2 : vector<8x1xi1>, vector<8x1xf32>
    %c1 = arith.constant 1 : index
    %20 = memref.load %arg0[%c1] : memref<2xi32, #tpu.memory_space<smem>>
    %c4_i32_2 = arith.constant 4 : i32
    %21 = vector.broadcast %c4_i32_2 : i32 to vector<8x1xi32>
    %22 = arith.cmpi sge, %0, %21 : vector<8x1xi32>
    %c8_i32 = arith.constant 8 : i32
    %23 = vector.broadcast %c8_i32 : i32 to vector<8x1xi32>
    %24 = arith.cmpi slt, %0, %23 : vector<8x1xi32>
    %25 = arith.andi %22, %24 : vector<8x1xi1>
    %c2_i32_3 = arith.constant 2 : i32
    %26 = arith.muli %c2_i32_3, %20 : i32
    %27 = arith.index_cast %26 : i32 to index
    %28 = memref.load %arg1[%27] : memref<200xf32, #tpu.memory_space<smem>>
    %29 = vector.broadcast %28 : f32 to vector<8x1xf32>
    %30 = arith.select %25, %29, %13 : vector<8x1xi1>, vector<8x1xf32>
    %c2_i32_4 = arith.constant 2 : i32
    %31 = arith.muli %c2_i32_4, %20 : i32
    %c1_i32_5 = arith.constant 1 : i32
    %32 = arith.addi %31, %c1_i32_5 : i32
    %33 = arith.index_cast %32 : i32 to index
    %34 = memref.load %arg1[%33] : memref<200xf32, #tpu.memory_space<smem>>
    %35 = vector.broadcast %34 : f32 to vector<8x1xf32>
    %36 = arith.select %25, %35, %19 : vector<8x1xi1>, vector<8x1xf32>
    %c0_6 = arith.constant 0 : index
    %c0_7 = arith.constant 0 : index
    %37 = vector.load %arg3[%c0_6, %c0_7] : memref<8x256xf32, #tpu.memory_space<vmem>>, vector<8x256xf32>
    %c0_8 = arith.constant 0 : index
    %c0_9 = arith.constant 0 : index
    %38 = vector.load %arg2[%c0_8, %c0_9] : memref<8x256xf32, #tpu.memory_space<vmem>>, vector<8x256xf32>
    %39 = vector.broadcast %30 : vector<8x1xf32> to vector<8x256xf32>
    %40 = arith.mulf %39, %38 : vector<8x256xf32>
    %41 = vector.broadcast %36 : vector<8x1xf32> to vector<8x256xf32>
    %42 = arith.mulf %41, %37 : vector<8x256xf32>
    %43 = arith.addf %40, %42 : vector<8x256xf32>
    %c0_10 = arith.constant 0 : index
    %c0_11 = arith.constant 0 : index
    %44 = vector.load %arg4[%c0_10, %c0_11] : memref<64x9xf32, #tpu.memory_space<vmem>>, vector<64x8xf32>
    %c0_12 = arith.constant 0 : index
    %c8 = arith.constant 8 : index
    %45 = vector.load %arg4[%c0_12, %c8] : memref<64x9xf32, #tpu.memory_space<vmem>>, vector<64x1xf32>
    %cst_13 = arith.constant dense<0.000000e+00> : vector<64x256xf32>
    %46 = tpu.matmul %44, %43, %cst_13 {dimension_numbers = #tpu.dot_dimension_numbers<[1], [0], [0], [1], [0, 0, 1, 1], [], []>, precision = #tpu.contract_precision<fp32>} : vector<64x8xf32>, vector<8x256xf32>, vector<64x256xf32> -> vector<64x256xf32>
    %47 = vector.broadcast %45 : vector<64x1xf32> to vector<64x256xf32>
    %48 = arith.addf %46, %47 : vector<64x256xf32>
    %49 = arith.negf %48 : vector<64x256xf32>
    %50 = math.exp %49 : vector<64x256xf32>
    %cst_14 = arith.constant 1.000000e+00 : f32
    %51 = vector.broadcast %cst_14 : f32 to vector<64x256xf32>
    %52 = arith.addf %51, %50 : vector<64x256xf32>
    %53 = arith.divf %51, %52 : vector<64x256xf32>
    %54 = arith.mulf %48, %53 : vector<64x256xf32>
    %c0_15 = arith.constant 0 : index
    %c0_16 = arith.constant 0 : index
    %55 = vector.load %arg5[%c0_15, %c0_16] : memref<8x65xf32, #tpu.memory_space<vmem>>, vector<8x64xf32>
    %c0_17 = arith.constant 0 : index
    %c64 = arith.constant 64 : index
    %56 = vector.load %arg5[%c0_17, %c64] : memref<8x65xf32, #tpu.memory_space<vmem>>, vector<8x1xf32>
    %cst_18 = arith.constant dense<0.000000e+00> : vector<8x256xf32>
    %57 = tpu.matmul %55, %54, %cst_18 {dimension_numbers = #tpu.dot_dimension_numbers<[1], [0], [0], [1], [0, 0, 1, 1], [], []>, precision = #tpu.contract_precision<fp32>} : vector<8x64xf32>, vector<64x256xf32>, vector<8x256xf32> -> vector<8x256xf32>
    %58 = vector.broadcast %56 : vector<8x1xf32> to vector<8x256xf32>
    %59 = arith.addf %57, %58 : vector<8x256xf32>
    %60 = arith.subf %59, %37 : vector<8x256xf32>
    %61 = arith.mulf %60, %60 : vector<8x256xf32>
    %c0_19 = arith.constant 0 : index
    %c0_20 = arith.constant 0 : index
    %62 = vector.load %arg6[%c0_19, %c0_20] : memref<8x256xf32, #tpu.memory_space<vmem>>, vector<8x256xf32>
    tpu.vector_store %arg6[%c0_19, %c0_20], %61 {strides = array<i32>} : memref<8x256xf32, #tpu.memory_space<vmem>>, vector<8x256xf32>,
    return
  }
}

</mosaic_0001>

<bundles_post_ra>
// kernel: tile.8
= control target key start
LH: loop header
LB: loop body
LE: loop exit
PB: predicated region body
PF: predicated region fallthrough
CT: control target
= control target key end

     0   :  { %s22_s0 = inlined_call_operand.vmem [shape: f32[4], index: 0, kind: input, shape index: {}]   ;;  %s23_s1 = inlined_call_operand.vmem [shape: f32[2,1,1,4], index: 1, kind: output, shape index: {}]  }
   0x1   :  { %v4_v0 = vld [vmem:[%s22_s0] ss:$0 sm:$0xff] }
   0x2   :  { %5 = vst [vmem:[%s23_s1] sm:$0x3] %v4_v0 }

// kernel: tile.0
= control target key start
LH: loop header
LB: loop body
LE: loop exit
PB: predicated region body
PF: predicated region fallthrough
CT: control target
= control target key end

     0   :  { %s35_s8 = smov 125   ;;  %vm8_vm0 = vcmask 7168   ;;  %s36_s11 = smov 126   ;;  %s62_s0 = inlined_call_operand.vmem [shape: f32[2,1,1,4], index: 0, kind: input, shape index: {}]   ;;  %s63_s1 = inlined_call_operand.vmem [shape: f32[8,1], index: 1, kind: output, shape index: {}]  }
   0x1   :  { %v5_v0 = vld [vmem:[%s62_s0] sm:$0x3]  ;;  %s34_s0 = smov 127  }
   0x2   :  { %6 = vst [vmem:[#allocation0] sm:$0x3] %v5_v0 }
   0x9   :  { %v10_v1 = vld [vmem:[#allocation0] sm:$0x3]  }
   0xa   :  { %v22_v2 = vld [vmem:[#allocation0] sm:$0x3]   ;;  %11 = vrot.lane.b32.xlu0 %v10_v1, %s34_s0 }
   0xb   :  { %23 = vrot.lane.b32.xlu1 %v22_v2, %s35_s8  ;;  %v7_v3 = vld [vmem:[#allocation0] sm:$0x3]  }
   0xc   :  { %v16_v4 = vld [vmem:[#allocation0] sm:$0x3]   ;;  %9 = vst.msk [vmem:[%s63_s1] ss:$4 sm:$0x3] %vm8_vm0, %v7_v3  }
   0xe   :  { %17 = vrot.lane.b32.xlu0 %v16_v4, %s36_s11 }
  0x7c   :  { %v12_v5 = vpop.permute.xlu0 %11  }
  0x7d   :  { %v24_v6 = vpop.permute.xlu1 %23   ;;  %28 = vst.msk [vmem:[%s63_s1 + $0x1] ss:$4 sm:$0x3] %vm8_vm0, %v12_v5  }
  0x7e   :  { %30 = vst.msk [vmem:[%s63_s1 + $0x3] ss:$4 sm:$0x3] %vm8_vm0, %v24_v6  }
  0x80   :  { %v18_v7 = vpop.permute.xlu0 %17  }
  0x81   :  { %29 = vst.msk [vmem:[%s63_s1 + $0x2] ss:$4 sm:$0x3] %vm8_vm0, %v18_v7  }

// kernel: gaussian_diffusion_trainer_forward.1
= control target key start
LH: loop header
LB: loop body
LE: loop exit
PB: predicated region body
PF: predicated region fallthrough
CT: control target
= control target key end

     0   :  { %11 = vsyncpa [#allocation3], 0  ;;  %s2605_s0 = inlined_call_operand.vmem [shape: s32[2], index: 0, kind: input, shape index: {}]   ;;  %s2606_s1 = inlined_call_operand.vmem [shape: f32[200], index: 1, kind: input, shape index: {}]   ;;  %s2607_s2 = inlined_call_operand.vmem [shape: f32[8,256], index: 2, kind: input, shape index: {}]   ;;  %s2608_s3 = inlined_call_operand.vmem [shape: f32[8,256], index: 3, kind: input, shape index: {}]   ;;  %s2609_s4 = inlined_call_operand.vmem [shape: f32[64,9], index: 4, kind: input, shape index: {}]   ;;  %s2610_s5 = inlined_call_operand.vmem [shape: f32[8,65], index: 5, kind: input, shape index: {}]   ;;  %s2611_s6 = inlined_call_operand.vmem [shape: f32[8,256], index: 6, kind: output, shape index: {}]  }
   0x1   :  { %s19_s23 = sshll.u32 %s2605_s0, 4  ;;  %s20_s23 = int_to_ptr.vmem [resolvable:$true] %s19_s23 }
   0x2   :  { %12 = vsyncpa [#allocation5], 0  ;;  %s29_s26 = sshll.u32 %s2606_s1, 4  ;;  %s1830_s27 = scalar_lea.vmem %s20_s23, 16  ;;  %s30_s26 = int_to_ptr.vmem [resolvable:$true] %s29_s26 }
   0x3   :  { %p1831_p0 = scmp.ne.s32.totalorder %s20_s23, %s1830_s27  ;;  %p1835_p1 = scmp.lt.s32.totalorder %s20_s23, %s20_s23 }
   0x4   :  { %p1836_p2 = scmp.lt.s32.totalorder %s1830_s27, %s1830_s27 }
   0x6   :  { %p1837_p3 = por %p1836_p2, %p1835_p1 }
   0x8   :  { %p1838_p4 = pnand %p1837_p3, %p1831_p0 }
   0xa   :  { %1841 = shalt.err (!%p1838_p4)
}
   0xb   :  { %s1858_s28 = smov [#allocation2]   ;;  %s1842_s29 = scalar_lea.vmem %s30_s26, 32 }
   0xc   :  { %22 = dma.vmem_to_smem %s20_s23, 16, %s1858_s28, [#allocation3]  }
   0xd   :  { %p1843_p5 = scmp.ne.s32.totalorder %s30_s26, %s1842_s29  ;;  %p1847_p6 = scmp.lt.s32.totalorder %s30_s26, %s30_s26 }
   0xe   :  { %p1848_p7 = scmp.lt.s32.totalorder %s1842_s29, %s1842_s29 }
  0x10   :  { %p1849_p8 = por %p1848_p7, %p1847_p6 }
  0x12   :  { %p1850_p9 = pnand %p1849_p8, %p1843_p5 }
  0x14   :  { %1853 = shalt.err (!%p1850_p9)
}
  0x15   :  { %s1859_s0 = smov [#allocation4]  }
  0x16   :  { %32 = dma.vmem_to_smem %s30_s26, 32, %s1859_s0, [#allocation5]  }
  0x17   :  { %1854 = dma.done.wait [#allocation3], 16  }
  0x18   :  { %1855 = vsyncadd [#allocation3], 4294967280 }
  0x19   :  { %1856 = dma.done.wait [#allocation5], 32  }
  0x1a   :  { %1857 = vsyncadd [#allocation5], 4294967264 }
  0x1b   :  { %47 = sfence }
  0x1c   :  { %s50_s1 = sld [smem:[#allocation2]]  ;;  %v2612_v0 = vmov 0.0   ;;  %v1908_v1 = vld [vmem:[%s2609_s4] sm:$0xff]  ;;  %vm132_vm0 = vcmask 64512   ;;  %v48_v2 = vlaneseq  ;;  %v1916_v4 = vld [vmem:[%s2609_s4 + $0x8] sm:$0xff]  ;;  %v86_v8 = vld [vmem:[%s2609_s4 + $0x10] sm:$0xff] }
  0x1d   :  { %s1738_s30 = sld [smem:[#allocation2 + $0x1]]  ;;  %215 = vmatprep.mubr.f32.mxu0 %v2612_v0  ;;  %378 = vmatprep.mubr.f32.mxu1 %v2612_v0  ;;  %v133_v3 = vsel %vm132_vm0, %v1908_v1, 0  ;;  %v135_v7 = vsel %vm132_vm0, %v1916_v4, 0  ;;  %v87_v9 = vld [vmem:[%s2609_s4 + $0x18] sm:$0xff]  ;;  %v137_v12 = vsel %vm132_vm0, %v86_v8, 0  ;;  %v77_v15 = vld [vmem:[%s2607_s2 + $0x8] sm:$0xff] }
  0x1e   :  { %v1918_v5 = vand.u32 4294901760, %v133_v3  ;;  %v49_v6 = vshrl.u32 %v48_v2, 7  ;;  %v1933_v11 = vand.u32 4294901760, %v135_v7  ;;  %v139_v13 = vsel %vm132_vm0, %v87_v9, 0  ;;  %v88_v17 = vld [vmem:[%s2609_s4 + $0x20] sm:$0xff]  ;;  %v89_v23 = vld [vmem:[%s2609_s4 + $0x28] sm:$0xff] }
  0x1f   :  { %v1940_v16 = vand.u32 4294901760, %v137_v12  ;;  %v76_v20 = vld [vmem:[%s2607_s2] sm:$0xff]  ;;  %v91_v24 = vld [vmem:[%s2609_s4 + $0x38] sm:$0xff]  ;;  %v1861_v25 = vmov 8   ;;  %v75_v28 = vld [vmem:[%s2608_s3 + $0x8] sm:$0xff]  ;;  %v1968_v32 = vand.u32 4294901760, %v139_v13 }
  0x20   :  { %v1931_v10 = vsub.f32 %v133_v3, %v1918_v5  ;;  %vm52_vm1 = vcmp.lt.s32.totalorder %v49_v6, 4  ;;  %vm63_vm2 = vcmp.ge.s32.totalorder %v49_v6, 4  ;;  %v1951_v22 = vsub.f32 %v135_v7, %v1933_v11  ;;  %1762 = vset.pattern.permute.xlu1 %v1861_v25  ;;  %1761 = vset.pattern.permute.xlu0 %v1861_v25  ;;  %v74_v29 = vld [vmem:[%s2608_s3] sm:$0xff]  ;;  %v90_v42 = vld [vmem:[%s2609_s4 + $0x30] sm:$0xff] }
  0x21   :  { %119 = vperm.xlu1 %1762, %v89_v23   ;;  %129 = vperm.xlu0 %1761, %v91_v24   ;;  %v141_v33 = vsel %vm132_vm0, %v88_v17, 0  ;;  %v1973_v37 = vsub.f32 %v137_v12, %v1940_v16  ;;  %v1984_v46 = vsub.f32 %v139_v13, %v1968_v32  ;;  %v143_v48 = vsel %vm132_vm0, %v89_v23, 0 }
  0x22   :  { %s1737_s11 = sshll.u32 %s50_s1, 1  ;;  %v218_v21 = vand.u32 4294901760, %v1931_v10  ;;  %v229_v41 = vand.u32 4294901760, %v1951_v22  ;;  %v1986_v47 = vand.u32 4294901760, %v141_v33  ;;  %v2002_v57 = vand.u32 4294901760, %v143_v48 }
  0x23   :  { %s55_s12 = sld [smem:[#allocation4 + %s1737_s11]]  ;;  %s58_s13 = sadd.s32 1, %s1737_s11  ;;  %v240_v45 = vand.u32 4294901760, %v1973_v37  ;;  %v251_v55 = vand.u32 4294901760, %v1984_v46  ;;  %v145_v58 = vsel %vm132_vm0, %v90_v42, 0  ;;  %vm1075_vm3 = vcmask 523264  }
  0x24   :  { %s59_s16 = sld [smem:[#allocation4 + %s58_s13]]  ;;  %s1739_s17 = sshll.u32 %s1738_s30, 1  ;;  %v219_v40 = vsub.f32 %v1931_v10, %v218_v21  ;;  %v230_v52 = vsub.f32 %v1951_v22, %v229_v41  ;;  %v2000_v56 = vsub.f32 %v141_v33, %v1986_v47  ;;  %v2019_v6 = vsub.f32 %v143_v48, %v2002_v57 }
  0x25   :  { %s67_s18 = sld [smem:[#allocation4 + %s1739_s17]]  ;;  %s70_s19 = sadd.s32 1, %s1739_s17  ;;  %114 = vperm.xlu1 %1762, %v88_v17   ;;  %124 = vperm.xlu0 %1761, %v90_v42   ;;  %v241_v62 = vsub.f32 %v1973_v37, %v240_v45  ;;  %v252_v3 = vsub.f32 %v1984_v46, %v251_v55  ;;  %v2021_v7 = vand.u32 4294901760, %v145_v58 }
  0x26   :  { %s1928_s22 = sld [smem:[#allocation4 + %s70_s19]]  ;;  %v220_v51 = vand.u32 4294901760, %v219_v40  ;;  %v231_v59 = vand.u32 4294901760, %v230_v52  ;;  %v273_v17 = vand.u32 4294901760, %v2019_v6 }
  0x27   :  { %v242_v13 = vand.u32 4294901760, %v241_v62 }
  0x29   :  { %v56_v14 = vstv %s55_s12  ;;  %104 = vperm.xlu1 %1762, %v86_v8   ;;  %109 = vperm.xlu0 %1761, %v87_v9   ;;  %v147_v8 = vsel %vm132_vm0, %v91_v24, 0 }
  0x2a   :  { %v57_v18 = vsel %vm52_vm1, %v56_v14, 0.0  ;;  %v60_v19 = vstv %s59_s16  ;;  %v262_v14 = vand.u32 4294901760, %v2000_v56 }
  0x2b   :  { %v61_v26 = vsel %vm52_vm1, %v60_v19, 0.0  ;;  %v68_v27 = vstv %s67_s18 }
  0x2c   :  { %v69_v30 = vsel %vm63_vm2, %v68_v27, %v57_v18  ;;  %v72_v31 = vstv %s1928_s22  ;;  %v2035_v18 = vsub.f32 %v145_v58, %v2021_v7 }
  0x2d   :  { %v73_v34 = vsel %vm63_vm2, %v72_v31, %v61_v26  ;;  %v79_v35 = vmul.f32 %v77_v15, %v69_v30  ;;  %v78_v36 = vmul.f32 %v76_v20, %v69_v30  ;;  %94 = vperm.xlu1 %1762, %v1908_v1   ;;  %99 = vperm.xlu0 %1761, %v1916_v4   ;;  %v2027_v1 = vand.u32 4294901760, %v147_v8 }
  0x2e   :  { %v81_v38 = vmul.f32 %v75_v28, %v73_v34  ;;  %v80_v39 = vmul.f32 %v74_v29, %v73_v34  ;;  %v253_v15 = vand.u32 4294901760, %v252_v3  ;;  %v263_v4 = vsub.f32 %v2000_v56, %v262_v14 }
  0x2f   :  { %v274_v20 = vsub.f32 %v2019_v6, %v273_v17  ;;  %v284_v23 = vand.u32 4294901760, %v2035_v18  ;;  %v2046_v24 = vsub.f32 %v147_v8, %v2027_v1 }
  0x30   :  { %v83_v43 = vadd.f32 %v81_v38, %v79_v35  ;;  %v82_v44 = vadd.f32 %v80_v39, %v78_v36  ;;  %v264_v19 = vand.u32 4294901760, %v263_v4 }
  0x31   :  { %v275_v25 = vand.u32 4294901760, %v274_v20  ;;  %v285_v26 = vsub.f32 %v2035_v18, %v284_v23  ;;  %v295_v27 = vand.u32 4294901760, %v2046_v24 }
  0x32   :  { %v179_v49 = vand.u32 4294901760, %v83_v43  ;;  %v1989_v50 = vand.u32 4294901760, %v82_v44 }
  0x33   :  { %v286_v28 = vand.u32 4294901760, %v285_v26  ;;  %v296_v29 = vsub.f32 %v2046_v24, %v295_v27 }
  0x34   :  { %180 = vmatprep.subr.mxu0 %v179_v49  ;;  %v335_v53 = vsub.f32 %v83_v43, %v179_v49  ;;  %v1995_v54 = vsub.f32 %v82_v44, %v1989_v50 }
  0x35   :  { %182 = vmatpush1.msra.mxu0 %v1989_v50  ;;  %v297_v30 = vand.u32 4294901760, %v296_v29 }
  0x36   :  { %221 = vmatmul.mubr.f32.vlgmr.msra.gmra.mxu0 %v220_v51  ;;  %v336_v60 = vand.u32 4294901760, %v335_v53  ;;  %v342_v61 = vand.u32 4294901760, %v1995_v54  ;;  %467 = vmatprep.subr.mxu0 %v335_v53 }
  0x37   :  { %226 = vmatprep.mubr.f32.mxu0 %v2612_v0  ;;  %470 = vmatpush1.msra.mxu0 %v1995_v54 }
  0x38   :  { %v337_v63 = vsub.f32 %v335_v53, %v336_v60  ;;  %v343_v2 = vsub.f32 %v1995_v54, %v342_v61  ;;  %740 = vmatprep.subr.mxu0 %v336_v60 }
  0x3a   :  { %232 = vmatmul.mubr.f32.gmra.mxu0 %v231_v59  ;;  %v338_v9 = vand.u32 4294901760, %v337_v63  ;;  %v344_v12 = vand.u32 4294901760, %v343_v2 }
  0x3b   :  { %237 = vmatprep.mubr.f32.mxu0 %v2612_v0 }
  0x3c   :  { %339 = vmatprep.subr.mxu1 %v338_v9 }
  0x3d   :  { %345 = vmatpush1.msra.mxu1 %v344_v12 }
  0x3e   :  { %243 = vmatmul.mubr.f32.gmra.mxu0 %v242_v13  ;;  %380 = vmatmul.mubr.f32.vlgmr.msra.gmra.mxu1 %v1918_v5 }
  0x3f   :  { %248 = vmatprep.mubr.f32.mxu0 %v2612_v0  ;;  %385 = vmatprep.mubr.f32.mxu1 %v2612_v0 }
  0x40   :  { %599 = vmatprep.subr.mxu1 %v179_v49 }
  0x41   :  { %601 = vmatpush1.msra.mxu1 %v1989_v50 }
  0x42   :  { %254 = vmatmul.mubr.f32.gmra.mxu0 %v253_v15  ;;  %387 = vmatmul.mubr.f32.gmra.mxu1 %v1933_v11 }
  0x43   :  { %259 = vmatprep.mubr.f32.mxu0 %v2612_v0  ;;  %392 = vmatprep.mubr.f32.mxu1 %v2612_v0 }
  0x44   :  { %865 = vmatprep.subr.mxu1 %v179_v49 }
  0x46   :  { %265 = vmatmul.mubr.f32.gmra.mxu0 %v264_v19  ;;  %394 = vmatmul.mubr.f32.gmra.mxu1 %v1940_v16 }
  0x47   :  { %270 = vmatprep.mubr.f32.mxu0 %v2612_v0  ;;  %399 = vmatprep.mubr.f32.mxu1 %v2612_v0 }
  0x4a   :  { %276 = vmatmul.mubr.f32.gmra.mxu0 %v275_v25  ;;  %401 = vmatmul.mubr.f32.gmra.mxu1 %v1968_v32 }
  0x4b   :  { %281 = vmatprep.mubr.f32.mxu0 %v2612_v0  ;;  %406 = vmatprep.mubr.f32.mxu1 %v2612_v0 }
  0x4e   :  { %287 = vmatmul.mubr.f32.gmra.mxu0 %v286_v28  ;;  %408 = vmatmul.mubr.f32.gmra.mxu1 %v1986_v47 }
  0x4f   :  { %292 = vmatprep.mubr.f32.mxu0 %v2612_v0  ;;  %413 = vmatprep.mubr.f32.mxu1 %v2612_v0 }
  0x52   :  { %298 = vmatmul.mubr.f32.gmra.mxu0 %v297_v30  ;;  %415 = vmatmul.mubr.f32.gmra.mxu1 %v2002_v57 }
  0x53   :  { %420 = vmatprep.mubr.f32.mxu1 %v2612_v0  ;;  %503 = vmatprep.mubr.f32.mxu0 %v2612_v0 }
  0x56   :  { %422 = vmatmul.mubr.f32.gmra.mxu1 %v2021_v7  ;;  %506 = vmatmul.mubr.f32.vlgmr.msra.gmra.mxu0 %v1931_v10 }
  0x57   :  { %427 = vmatprep.mubr.f32.mxu1 %v2612_v0  ;;  %511 = vmatprep.mubr.f32.mxu0 %v2612_v0 }
  0x58   :  { %744 = vmatpush1.msra.mxu0 %v342_v61 }
  0x5a   :  { %429 = vmatmul.mubr.f32.gmra.mxu1 %v2027_v1  ;;  %514 = vmatmul.mubr.f32.gmra.mxu0 %v1951_v22 }
  0x5b   :  { %519 = vmatprep.mubr.f32.mxu0 %v2612_v0  ;;  %634 = vmatprep.mubr.f32.mxu1 %v2612_v0 }
  0x5e   :  { %522 = vmatmul.mubr.f32.gmra.mxu0 %v1973_v37  ;;  %638 = vmatmul.mubr.f32.vlgmr.msra.gmra.mxu1 %v218_v21 }
  0x5f   :  { %527 = vmatprep.mubr.f32.mxu0 %v2612_v0  ;;  %643 = vmatprep.mubr.f32.mxu1 %v2612_v0 }
  0x60   :  { %867 = vmatpush1.msra.mxu1 %v1989_v50 }
  0x62   :  { %530 = vmatmul.mubr.f32.gmra.mxu0 %v1984_v46  ;;  %647 = vmatmul.mubr.f32.gmra.mxu1 %v229_v41 }
  0x63   :  { %535 = vmatprep.mubr.f32.mxu0 %v2612_v0  ;;  %652 = vmatprep.mubr.f32.mxu1 %v2612_v0 }
  0x66   :  { %538 = vmatmul.mubr.f32.gmra.mxu0 %v2000_v56  ;;  %656 = vmatmul.mubr.f32.gmra.mxu1 %v240_v45 }
  0x67   :  { %543 = vmatprep.mubr.f32.mxu0 %v2612_v0  ;;  %661 = vmatprep.mubr.f32.mxu1 %v2612_v0 }
  0x6a   :  { %546 = vmatmul.mubr.f32.gmra.mxu0 %v2019_v6  ;;  %665 = vmatmul.mubr.f32.gmra.mxu1 %v251_v55 }
  0x6b   :  { %551 = vmatprep.mubr.f32.mxu0 %v2612_v0  ;;  %670 = vmatprep.mubr.f32.mxu1 %v2612_v0 }
  0x6e   :  { %554 = vmatmul.mubr.f32.gmra.mxu0 %v2035_v18  ;;  %674 = vmatmul.mubr.f32.gmra.mxu1 %v262_v14 }
  0x6f   :  { %559 = vmatprep.mubr.f32.mxu0 %v2612_v0  ;;  %679 = vmatprep.mubr.f32.mxu1 %v2612_v0 }
  0x72   :  { %562 = vmatmul.mubr.f32.gmra.mxu0 %v2046_v24  ;;  %683 = vmatmul.mubr.f32.gmra.mxu1 %v273_v17 }
  0x73   :  { %688 = vmatprep.mubr.f32.mxu1 %v2612_v0  ;;  %777 = vmatprep.mubr.f32.mxu0 %v2612_v0 }
  0x76   :  { %692 = vmatmul.mubr.f32.gmra.mxu1 %v284_v23  ;;  %779 = vmatmul.mubr.f32.vlgmr.msra.gmra.mxu0 %v1918_v5 }
  0x77   :  { %697 = vmatprep.mubr.f32.mxu1 %v2612_v0  ;;  %784 = vmatprep.mubr.f32.mxu0 %v2612_v0 }
  0x7a   :  { %701 = vmatmul.mubr.f32.gmra.mxu1 %v295_v27  ;;  %786 = vmatmul.mubr.f32.gmra.mxu0 %v1933_v11 }
  0x7b   :  { %791 = vmatprep.mubr.f32.mxu0 %v2612_v0  ;;  %900 = vmatprep.mubr.f32.mxu1 %v2612_v0 }
  0x7e   :  { %793 = vmatmul.mubr.f32.gmra.mxu0 %v1940_v16  ;;  %902 = vmatmul.mubr.f32.vlgmr.msra.gmra.mxu1 %v1918_v5 }
  0x7f   :  { %798 = vmatprep.mubr.f32.mxu0 %v2612_v0  ;;  %907 = vmatprep.mubr.f32.mxu1 %v2612_v0 }
  0x82   :  { %800 = vmatmul.mubr.f32.gmra.mxu0 %v1968_v32  ;;  %909 = vmatmul.mubr.f32.gmra.mxu1 %v1933_v11 }
  0x83   :  { %805 = vmatprep.mubr.f32.mxu0 %v2612_v0  ;;  %914 = vmatprep.mubr.f32.mxu1 %v2612_v0 }
  0x86   :  { %807 = vmatmul.mubr.f32.gmra.mxu0 %v1986_v47  ;;  %916 = vmatmul.mubr.f32.gmra.mxu1 %v1940_v16 }
  0x87   :  { %812 = vmatprep.mubr.f32.mxu0 %v2612_v0  ;;  %921 = vmatprep.mubr.f32.mxu1 %v2612_v0 }
  0x8a   :  { %814 = vmatmul.mubr.f32.gmra.mxu0 %v2002_v57  ;;  %923 = vmatmul.mubr.f32.gmra.mxu1 %v1968_v32 }
  0x8b   :  { %819 = vmatprep.mubr.f32.mxu0 %v2612_v0  ;;  %928 = vmatprep.mubr.f32.mxu1 %v2612_v0 }
  0x8e   :  { %821 = vmatmul.mubr.f32.gmra.mxu0 %v2021_v7  ;;  %930 = vmatmul.mubr.f32.gmra.mxu1 %v1986_v47 }
  0x8f   :  { %826 = vmatprep.mubr.f32.mxu0 %v2612_v0  ;;  %935 = vmatprep.mubr.f32.mxu1 %v2612_v0 }
  0x92   :  { %828 = vmatmul.mubr.f32.gmra.mxu0 %v2027_v1  ;;  %937 = vmatmul.mubr.f32.gmra.mxu1 %v2002_v57 }
  0x93   :  { %942 = vmatprep.mubr.f32.mxu1 %v2612_v0  ;;  %1158 = vmatprep.mubr.f32.mxu0 %v2612_v0 }
  0x96   :  { %944 = vmatmul.mubr.f32.gmra.mxu1 %v2021_v7 }
  0x97   :  { %949 = vmatprep.mubr.f32.mxu1 %v2612_v0 }
  0x9a   :  { %951 = vmatmul.mubr.f32.gmra.mxu1 %v2027_v1 }
  0x9b   :  { %1314 = vmatprep.mubr.f32.mxu1 %v2612_v0 }
  0x9c   :  { %v120_v5 = vpop.permute.xlu1 %119  ;;  %v2140_v10 = vpop.permute.xlu0 %129 }
  0xa0   :  { %v115_v11 = vpop.permute.xlu1 %114  ;;  %v2142_v16 = vpop.permute.xlu0 %124 }
  0xa4   :  { %v105_v21 = vpop.permute.xlu1 %104  ;;  %v110_v31 = vpop.permute.xlu0 %109 }
  0xa8   :  { %v95_v33 = vpop.permute.xlu1 %94  ;;  %v100_v37 = vpop.permute.xlu0 %99 }
  0xf6   :  { %v222_v22 = vpop.f32.mrf.mxu0 }
  0xf7   :  { %v223_v35 = vadd.f32 %v222_v22, %v95_v33 }
  0xf8   :  { %v224_v32 = vpop.f32.mrf.mxu0 }
  0xf9   :  { %v225_v40 = vadd.f32 %v224_v32, %v95_v33 }
  0xfa   :  { %v233_v34 = vpop.f32.mrf.mxu0 }
  0xfb   :  { %v234_v42 = vadd.f32 %v233_v34, %v100_v37 }
  0xfc   :  { %v235_v36 = vpop.f32.mrf.mxu0 }
  0xfd   :  { %v236_v49 = vadd.f32 %v235_v36, %v100_v37 }
  0xfe   :  { %v244_v38 = vpop.f32.mrf.mxu0  ;;  %v381_v39 = vpop.f32.mrf.mxu1 }
  0xff   :  { %v382_v41 = vadd.f32 %v381_v39, %v223_v35  ;;  %v245_v48 = vadd.f32 %v244_v38, %v105_v21 }
 0x100   :  { %v246_v43 = vpop.f32.mrf.mxu0  ;;  %v383_v44 = vpop.f32.mrf.mxu1 }
 0x101   :  { %v384_v45 = vadd.f32 %v383_v44, %v225_v40  ;;  %v247_v56 = vadd.f32 %v246_v43, %v105_v21 }
 0x102   :  { %v255_v46 = vpop.f32.mrf.mxu0  ;;  %v388_v47 = vpop.f32.mrf.mxu1 }
 0x103   :  { %v389_v50 = vadd.f32 %v388_v47, %v234_v42  ;;  %v256_v57 = vadd.f32 %v255_v46, %v110_v31 }
 0x104   :  { %v257_v51 = vpop.f32.mrf.mxu0  ;;  %v390_v52 = vpop.f32.mrf.mxu1 }
 0x105   :  { %v391_v53 = vadd.f32 %v390_v52, %v236_v49  ;;  %v258_v2 = vadd.f32 %v257_v51, %v110_v31 }
 0x106   :  { %v266_v54 = vpop.f32.mrf.mxu0  ;;  %v395_v55 = vpop.f32.mrf.mxu1 }
 0x107   :  { %v2144_v58 = vadd.f32 %v395_v55, %v245_v48  ;;  %v267_v3 = vadd.f32 %v266_v54, %v115_v11 }
 0x108   :  { %v268_v59 = vpop.f32.mrf.mxu0  ;;  %v397_v60 = vpop.f32.mrf.mxu1 }
 0x109   :  { %v2146_v61 = vadd.f32 %v397_v60, %v247_v56  ;;  %v269_v14 = vadd.f32 %v268_v59, %v115_v11 }
 0x10a   :  { %v277_v62 = vpop.f32.mrf.mxu0  ;;  %v402_v63 = vpop.f32.mrf.mxu1 }
 0x10b   :  { %v2148_v6 = vadd.f32 %v402_v63, %v256_v57  ;;  %v278_v1 = vadd.f32 %v277_v62, %v120_v5 }
 0x10c   :  { %v279_v7 = vpop.f32.mrf.mxu0  ;;  %v404_v8 = vpop.f32.mrf.mxu1 }
 0x10d   :  { %v2150_v9 = vadd.f32 %v404_v8, %v258_v2  ;;  %v280_v23 = vadd.f32 %v279_v7, %v120_v5 }
 0x10e   :  { %v288_v12 = vpop.f32.mrf.mxu0  ;;  %v409_v13 = vpop.f32.mrf.mxu1 }
 0x10f   :  { %v2152_v15 = vadd.f32 %v409_v13, %v267_v3  ;;  %v289_v24 = vadd.f32 %v288_v12, %v2142_v16 }
 0x110   :  { %v2154_v4 = vpop.f32.mrf.mxu0  ;;  %v411_v17 = vpop.f32.mrf.mxu1 }
 0x111   :  { %v2156_v18 = vadd.f32 %v411_v17, %v269_v14 }
 0x112   :  { %v2158_v19 = vpop.f32.mrf.mxu0  ;;  %v416_v20 = vpop.f32.mrf.mxu1 }
 0x113   :  { %v2161_v25 = vadd.f32 %v416_v20, %v278_v1 }
 0x114   :  { %v2163_v26 = vpop.f32.mrf.mxu0  ;;  %v418_v27 = vpop.f32.mrf.mxu1 }
 0x115   :  { %v2165_v28 = vadd.f32 %v418_v27, %v280_v23 }
 0x116   :  { %v423_v29 = vpop.f32.mrf.mxu1  ;;  %v507_v30 = vpop.f32.mrf.mxu0 }
 0x117   :  { %v2167_v11 = vadd.f32 %v423_v29, %v289_v24  ;;  %v508_v21 = vadd.f32 %v507_v30, %v382_v41 }
 0x118   :  { %v2169_v22 = vpop.f32.mrf.mxu1  ;;  %v509_v31 = vpop.f32.mrf.mxu0 }
 0x119   :  { %v510_v32 = vadd.f32 %v509_v31, %v384_v45  ;;  %v2216_v31 = vld [vmem:[%s2610_s5] sm:$0xff] }
 0x11a   :  { %v2171_v33 = vpop.f32.mrf.mxu1  ;;  %v515_v5 = vpop.f32.mrf.mxu0  ;;  %2619 = vst [vmem:[#allocation12_spill] sm:$0xff] %v2216_v31 }
 0x11b   :  { %v516_v34 = vadd.f32 %v515_v5, %v389_v50 }
 0x11c   :  { %v2173_v35 = vpop.f32.mrf.mxu1  ;;  %v517_v36 = vpop.f32.mrf.mxu0 }
 0x11d   :  { %v518_v37 = vadd.f32 %v517_v36, %v391_v53 }
 0x11e   :  { %v2175_v38 = vpop.f32.mrf.mxu0  ;;  %v639_v39 = vpop.f32.mrf.mxu1 }
 0x11f   :  { %v640_v40 = vadd.f32 %v639_v39, %v508_v21 }
 0x120   :  { %v525_v42 = vpop.f32.mrf.mxu0  ;;  %v641_v43 = vpop.f32.mrf.mxu1 }
 0x121   :  { %v642_v44 = vadd.f32 %v641_v43, %v510_v32  ;;  %v1862_v32 = vmov 64   ;;  %v526_v39 = vadd.f32 %v525_v42, %v2146_v61  ;;  %v291_v43 = vadd.f32 %v2154_v4, %v2142_v16 }
 0x122   :  { %v2177_v41 = vpop.f32.mrf.mxu0  ;;  %v648_v46 = vpop.f32.mrf.mxu1  ;;  %1763 = vset.pattern.permute.xlu0 %v1862_v32 }
 0x123   :  { %v2179_v47 = vadd.f32 %v648_v46, %v516_v34  ;;  %1072 = vperm.xlu0 %1763, %v2216_v31   ;;  %v300_v46 = vadd.f32 %v2158_v19, %v2140_v10  ;;  %v302_v31 = vadd.f32 %v2163_v26, %v2140_v10  ;;  %v524_v19 = vadd.f32 %v2175_v38, %v2144_v58 }
 0x124   :  { %v533_v45 = vpop.f32.mrf.mxu0  ;;  %v650_v48 = vpop.f32.mrf.mxu1  ;;  %v532_v10 = vadd.f32 %v2177_v41, %v2148_v6 }
 0x125   :  { %v651_v49 = vadd.f32 %v650_v48, %v518_v37  ;;  %v534_v32 = vadd.f32 %v533_v45, %v2150_v9  ;;  %v431_v9 = vadd.f32 %v2171_v33, %v300_v46 }
 0x126   :  { %v539_v50 = vpop.f32.mrf.mxu0  ;;  %v657_v51 = vpop.f32.mrf.mxu1 }
 0x128   :  { %v2181_v52 = vpop.f32.mrf.mxu0  ;;  %v659_v53 = vpop.f32.mrf.mxu1 }
 0x129   :  { %v542_v38 = vadd.f32 %v2181_v52, %v2156_v18 }
 0x12a   :  { %v547_v54 = vpop.f32.mrf.mxu0  ;;  %v666_v55 = vpop.f32.mrf.mxu1 }
 0x12b   :  { %v548_v33 = vadd.f32 %v547_v54, %v2161_v25 }
 0x12c   :  { %v2183_v56 = vpop.f32.mrf.mxu0  ;;  %v668_v57 = vpop.f32.mrf.mxu1 }
 0x12d   :  { %v550_v41 = vadd.f32 %v2183_v56, %v2165_v28 }
 0x12e   :  { %v2185_v59 = vpop.f32.mrf.mxu0  ;;  %v2187_v60 = vpop.f32.mrf.mxu1 }
 0x130   :  { %v2189_v62 = vpop.f32.mrf.mxu0  ;;  %v2191_v63 = vpop.f32.mrf.mxu1 }
 0x131   :  { %v678_v25 = vadd.f32 %v2191_v63, %v542_v38 }
 0x132   :  { %v2193_v2 = vpop.f32.mrf.mxu0  ;;  %v2195_v3 = vpop.f32.mrf.mxu1 }
 0x133   :  { %v685_v28 = vadd.f32 %v2195_v3, %v548_v33 }
 0x134   :  { %v2197_v7 = vpop.f32.mrf.mxu0  ;;  %v2199_v8 = vpop.f32.mrf.mxu1 }
 0x135   :  { %2615 = vst [vmem:[#allocation8_spill] sm:$0xff] %v2197_v7  ;;  %v426_v7 = vadd.f32 %v2169_v22, %v291_v43 }
 0x136   :  { %v2201_v12 = vpop.f32.mrf.mxu1  ;;  %v780_v13 = vpop.f32.mrf.mxu0 }
 0x137   :  { %v781_v48 = vadd.f32 %v780_v13, %v640_v40  ;;  %v669_v40 = vadd.f32 %v668_v57, %v534_v32  ;;  %v667_v57 = vadd.f32 %v666_v55, %v532_v10  ;;  %v558_v18 = vadd.f32 %v2189_v62, %v426_v7 }
 0x138   :  { %v2203_v14 = vpop.f32.mrf.mxu1  ;;  %v782_v1 = vpop.f32.mrf.mxu0 }
 0x139   :  { %2616 = vst [vmem:[#allocation9_spill] sm:$0xff] %v2203_v14 }
 0x13a   :  { %v2205_v17 = vpop.f32.mrf.mxu1  ;;  %v2207_v20 = vpop.f32.mrf.mxu0 }
 0x13b   :  { %2617 = vst [vmem:[#allocation10_spill] sm:$0xff] %v2205_v17  ;;  %v660_v17 = vadd.f32 %v659_v53, %v526_v39  ;;  %v658_v53 = vadd.f32 %v657_v51, %v524_v19  ;;  %v556_v51 = vadd.f32 %v2185_v59, %v2167_v11 }
 0x13c   :  { %v2209_v23 = vpop.f32.mrf.mxu1  ;;  %v789_v24 = vpop.f32.mrf.mxu0 }
 0x13d   :  { %2618 = vst [vmem:[#allocation11_spill] sm:$0xff] %v2209_v23  ;;  %v790_v61 = vadd.f32 %v789_v24, %v651_v49  ;;  %v540_v49 = vadd.f32 %v539_v50, %v2152_v15 }
 0x13e   :  { %v2211_v27 = vpop.f32.mrf.mxu0  ;;  %v903_v29 = vpop.f32.mrf.mxu1 }
 0x13f   :  { %v2232_v42 = vadd.f32 %v903_v29, %v781_v48  ;;  %v676_v24 = vadd.f32 %v2187_v60, %v540_v49  ;;  %v564_v29 = vadd.f32 %v2193_v2, %v431_v9  ;;  %v694_v2 = vadd.f32 %v2201_v12, %v556_v51 }
 0x140   :  { %v796_v30 = vpop.f32.mrf.mxu0  ;;  %v905_v21 = vpop.f32.mrf.mxu1  ;;  %v795_v3 = vadd.f32 %v2211_v27, %v658_v53  ;;  %v2621_v46 = vld [vmem:[#allocation9_spill] sm:$0xff] }
 0x141   :  { %v797_v13 = vadd.f32 %v796_v30, %v660_v17  ;;  %v687_v30 = vadd.f32 %v2199_v8, %v550_v41  ;;  %v788_v8 = vadd.f32 %v2207_v20, %v2179_v47  ;;  %v696_v48 = vadd.f32 %v2621_v46, %v558_v18  ;;  %v2622_v20 = vld [vmem:[#allocation8_spill] sm:$0xff] }
 0x142   :  { %v801_v5 = vpop.f32.mrf.mxu0  ;;  %v2218_v34 = vpop.f32.mrf.mxu1 }
 0x143   :  { %2620 = vst [vmem:[#allocation13_spill] sm:$0xff] %v2218_v34  ;;  %v783_v34 = vadd.f32 %v782_v1, %v642_v44  ;;  %v433_v44 = vadd.f32 %v2173_v35, %v302_v31  ;;  %v1740_v35 = vmul.f32 -1.442695, %v2232_v42  ;;  %v802_v63 = vadd.f32 %v801_v5, %v667_v57 }
 0x144   :  { %v803_v36 = vpop.f32.mrf.mxu0  ;;  %v912_v37 = vpop.f32.mrf.mxu1  ;;  %v2625_v49 = vld [vmem:[#allocation11_spill] sm:$0xff] }
 0x145   :  { %v2236_v14 = vadd.f32 %v905_v21, %v783_v34  ;;  %v2242_v26 = vadd.f32 %v912_v37, %v790_v61  ;;  %v804_v1 = vadd.f32 %v803_v36, %v669_v40  ;;  %1764 = vpow2.f32 %v1740_v35 }
 0x146   :  { %v808_v0 = vpop.f32.mrf.mxu0  ;;  %v2226_v23 = vpop.f32.mrf.mxu1 }
 0x147   :  { %v1741_v15 = vmul.f32 -1.442695, %v2236_v14  ;;  %v1743_v52 = vmul.f32 -1.442695, %v2242_v26  ;;  %v809_v56 = vadd.f32 %v808_v0, %v676_v24  ;;  %v2280_v5 = vadd.f32 %v2226_v23, %v795_v3 }
 0x148   :  { %v810_v16 = vpop.f32.mrf.mxu0  ;;  %v919_v4 = vpop.f32.mrf.mxu1 }
 0x149   :  { %v2245_v58 = vadd.f32 %v919_v4, %v797_v13  ;;  %v811_v21 = vadd.f32 %v810_v16, %v678_v25  ;;  %1766 = vpow2.f32 %v1741_v15  ;;  %v566_v16 = vadd.f32 %v2622_v20, %v433_v44  ;;  %v2624_v13 = vld [vmem:[#allocation10_spill] sm:$0xff] }
 0x14a   :  { %v815_v22 = vpop.f32.mrf.mxu0  ;;  %v924_v45 = vpop.f32.mrf.mxu1  ;;  %1768 = vpow2.f32 %v1743_v52  ;;  %v2623_v4 = vld [vmem:[#allocation13_spill] sm:$0xff]  ;;  %v703_v9 = vadd.f32 %v2624_v13, %v564_v29  ;;  %v2626_v13 = vld [vmem:[#allocation12_spill] sm:$0xff] }
 0x14b   :  { %v1745_v60 = vmul.f32 -1.442695, %v2245_v58  ;;  %v816_v7 = vadd.f32 %v815_v22, %v685_v28  ;;  %v2275_v36 = vadd.f32 %v924_v45, %v802_v63  ;;  %v2288_v19 = vadd.f32 %v2623_v4, %v788_v8 }
 0x14c   :  { %v817_v17 = vpop.f32.mrf.mxu0  ;;  %v926_v6 = vpop.f32.mrf.mxu1  ;;  %v705_v53 = vadd.f32 %v2625_v49, %v566_v16 }
 0x14d   :  { %v2255_v50 = vadd.f32 %v926_v6, %v804_v1  ;;  %1770 = vpow2.f32 %v1745_v60  ;;  %v818_v39 = vadd.f32 %v817_v17, %v687_v30  ;;  %v1746_v10 = vmul.f32 -1.442695, %v2275_v36 }
 0x14e   :  { %v822_v54 = vpop.f32.mrf.mxu0  ;;  %v931_v55 = vpop.f32.mrf.mxu1  ;;  %v1744_v1 = vmul.f32 -1.442695, %v2280_v5  ;;  %v1742_v6 = vmul.f32 -1.442695, %v2288_v19 }
 0x14f   :  { %v1747_v11 = vmul.f32 -1.442695, %v2255_v50  ;;  %v2267_v31 = vadd.f32 %v931_v55, %v809_v56  ;;  %v823_v32 = vadd.f32 %v822_v54, %v694_v2 }
 0x150   :  { %v824_v59 = vpop.f32.mrf.mxu0  ;;  %v933_v62 = vpop.f32.mrf.mxu1 }
 0x151   :  { %v2271_v0 = vadd.f32 %v933_v62, %v811_v21  ;;  %1772 = vpow2.f32 %v1747_v11  ;;  %v1748_v61 = vmul.f32 -1.442695, %v2267_v31  ;;  %v825_v22 = vadd.f32 %v824_v59, %v696_v48 }
 0x152   :  { %v938_v34 = vpop.f32.mrf.mxu1  ;;  %v829_v27 = vpop.f32.mrf.mxu0 }
 0x153   :  { %v2277_v37 = vadd.f32 %v938_v34, %v816_v7  ;;  %v1749_v12 = vmul.f32 -1.442695, %v2271_v0  ;;  %v830_v57 = vadd.f32 %v829_v27, %v703_v9  ;;  %v1765_v25 = vpop.eup %1764  ;;  %v1076_v9 = vsel %vm1075_vm3, %v2626_v13, 0 }
 0x154   :  { %v940_v43 = vpop.f32.mrf.mxu1  ;;  %v831_v44 = vpop.f32.mrf.mxu0  ;;  %v1005_v60 = vadd.f32 1.0, %v1765_v25 }
 0x155   :  { %v1750_v47 = vmul.f32 -1.442695, %v2277_v37  ;;  %1774 = vpow2.f32 %v1749_v12  ;;  %v2290_v23 = vadd.f32 %v940_v43, %v818_v39  ;;  %v832_v24 = vadd.f32 %v831_v44, %v705_v53 }
 0x156   :  { %v945_v40 = vpop.f32.mrf.mxu1  ;;  %v1767_v55 = vpop.eup %1766 }
 0x157   :  { %v2294_v45 = vadd.f32 %v945_v40, %v823_v32  ;;  %1776 = vpow2.f32 %v1750_v47  ;;  %v1751_v38 = vmul.f32 -1.442695, %v2290_v23  ;;  %v1769_v29 = vpop.eup %1768  ;;  %v1006_v21 = vadd.f32 1.0, %v1767_v55 }
 0x158   :  { %v947_v33 = vpop.f32.mrf.mxu1  ;;  %1778 = vpow2.f32 %v1748_v61  ;;  %v1008_v11 = vadd.f32 1.0, %v1769_v29 }
 0x159   :  { %v1752_v35 = vmul.f32 -1.442695, %v2294_v45  ;;  %v2300_v17 = vadd.f32 %v947_v33, %v825_v22  ;;  %1780 = vpow2.f32 %v1751_v38 }
 0x15a   :  { %v952_v41 = vpop.f32.mrf.mxu1  ;;  %1782 = vpow2.f32 %v1746_v10  ;;  %v1771_v56 = vpop.eup %1770 }
 0x15b   :  { %v1753_v15 = vmul.f32 -1.442695, %v2300_v17  ;;  %v2304_v51 = vadd.f32 %v952_v41, %v830_v57  ;;  %1784 = vpow2.f32 %v1752_v35  ;;  %v1010_v62 = vadd.f32 1.0, %v1771_v56 }
 0x15c   :  { %v954_v18 = vpop.f32.mrf.mxu1  ;;  %1786 = vpow2.f32 %v1744_v1  ;;  %v2311_v1 = vand.u32 4294901760, %v1076_v9 }
 0x15d   :  { %v1754_v52 = vmul.f32 -1.442695, %v2304_v51  ;;  %v2307_v54 = vadd.f32 %v954_v18, %v832_v24  ;;  %1788 = vpow2.f32 %v1753_v15 }
 0x15e   :  { %1790 = vpow2.f32 %v1742_v6  ;;  %v1773_v30 = vpop.eup %1772  ;;  %v2314_v35 = vsub.f32 %v1076_v9, %v2311_v1 }
 0x15f   :  { %v1755_v28 = vmul.f32 -1.442695, %v2307_v54  ;;  %1792 = vpow2.f32 %v1754_v52  ;;  %v1012_v63 = vadd.f32 1.0, %v1773_v30 }
 0x160   :  { %v1161_v18 = vand.u32 4294901760, %v2314_v35 }
 0x161   :  { %1794 = vpow2.f32 %v1755_v28 }
 0x162   :  { %v1775_v59 = vpop.eup %1774  ;;  %1796 = vrcp.f32 %v1005_v60 }
 0x163   :  { %1798 = vrcp.f32 %v1006_v21  ;;  %v1014_v2 = vadd.f32 1.0, %v1775_v59 }
 0x164   :  { %v1777_v7 = vpop.eup %1776  ;;  %1800 = vrcp.f32 %v1008_v11 }
 0x165   :  { %v1779_v3 = vpop.eup %1778  ;;  %1802 = vrcp.f32 %v1010_v62  ;;  %v1015_v8 = vadd.f32 1.0, %v1777_v7 }
 0x166   :  { %v1781_v34 = vpop.eup %1780  ;;  %1804 = vrcp.f32 %v1012_v63  ;;  %v1013_v43 = vadd.f32 1.0, %v1779_v3 }
 0x167   :  { %v1783_v39 = vpop.eup %1782  ;;  %v1016_v12 = vadd.f32 1.0, %v1781_v34  ;;  %1806 = vrcp.f32 %v1014_v2 }
 0x168   :  { %v1785_v27 = vpop.eup %1784  ;;  %v1011_v61 = vadd.f32 1.0, %v1783_v39 }
 0x169   :  { %v1787_v46 = vpop.eup %1786  ;;  %1808 = vrcp.f32 %v1016_v12  ;;  %v1017_v48 = vadd.f32 1.0, %v1785_v27 }
 0x16a   :  { %v1789_v32 = vpop.eup %1788  ;;  %1810 = vrcp.f32 %v1015_v8  ;;  %v1009_v4 = vadd.f32 1.0, %v1787_v46 }
 0x16b   :  { %v1791_v47 = vpop.eup %1790  ;;  %1812 = vrcp.f32 %v1017_v48  ;;  %v1018_v20 = vadd.f32 1.0, %v1789_v32 }
 0x16c   :  { %v1793_v16 = vpop.eup %1792  ;;  %1814 = vrcp.f32 %v1013_v43  ;;  %v1007_v22 = vadd.f32 1.0, %v1791_v47 }
 0x16d   :  { %1816 = vrcp.f32 %v1018_v20  ;;  %v1019_v40 = vadd.f32 1.0, %v1793_v16 }
 0x16e   :  { %v1795_v10 = vpop.eup %1794  ;;  %1818 = vrcp.f32 %v1011_v61 }
 0x16f   :  { %1820 = vrcp.f32 %v1019_v40  ;;  %v1020_v49 = vadd.f32 1.0, %v1795_v10  ;;  %v1797_v53 = vpop.eup %1796 }
 0x170   :  { %1822 = vrcp.f32 %v1009_v4  ;;  %v1799_v44 = vpop.eup %1798  ;;  %v2323_v11 = vmul.f32 %v1797_v53, %v2232_v42 }
 0x171   :  { %1824 = vrcp.f32 %v1020_v49  ;;  %v1801_v38 = vpop.eup %1800  ;;  %v1054_v7 = vmul.f32 %v1799_v44, %v2236_v14 }
 0x172   :  { %1826 = vrcp.f32 %v1007_v22  ;;  %v1803_v33 = vpop.eup %1802 }
 0x173   :  { %v1805_v57 = vpop.eup %1804 }
 0x174   :  { %v1807_v6 = vpop.eup %1806 }
 0x175   :  { %v1062_v60 = vmul.f32 %v1807_v6, %v2271_v0 }
 0x176   :  { %v1809_v41 = vpop.eup %1808 }
 0x177   :  { %v1811_v24 = vpop.eup %1810  ;;  %v1064_v52 = vmul.f32 %v1809_v41, %v2290_v23  ;;  %v2331_v23 = vsub.f32 %v2314_v35, %v1161_v18  ;;  %v2344_v8 = vand.u32 4294901760, %v1062_v60 }
 0x178   :  { %v1813_v15 = vpop.eup %1812  ;;  %v1063_v28 = vmul.f32 %v1811_v24, %v2277_v37  ;;  %v1060_v37 = vmul.f32 %v1805_v57, %v2255_v50 }
 0x179   :  { %v1815_v25 = vpop.eup %1814  ;;  %v1065_v55 = vmul.f32 %v1813_v15, %v2294_v45  ;;  %v2334_v63 = vand.u32 4294901760, %v1064_v52  ;;  %v2378_v61 = vsub.f32 %v1062_v60, %v2344_v8  ;;  %v2425_v15 = vand.u32 4294901760, %v2323_v11 }
 0x17a   :  { %v1817_v29 = vpop.eup %1816  ;;  %v1061_v59 = vmul.f32 %v1815_v25, %v2267_v31  ;;  %v1058_v31 = vmul.f32 %v1803_v33, %v2245_v58  ;;  %v2342_v3 = vand.u32 4294901760, %v1063_v28 }
 0x17b   :  { %v1819_v56 = vpop.eup %1818  ;;  %v1066_v30 = vmul.f32 %v1817_v29, %v2300_v17  ;;  %v2326_v62 = vand.u32 4294901760, %v1065_v55  ;;  %v2362_v43 = vsub.f32 %v1064_v52, %v2334_v63  ;;  %v1224_v24 = vand.u32 4294901760, %v2378_v61 }
 0x17c   :  { %v1821_v21 = vpop.eup %1820  ;;  %v1059_v2 = vmul.f32 %v1819_v56, %v2275_v36  ;;  %v2354_v27 = vand.u32 4294901760, %v1061_v59  ;;  %v2359_v36 = vand.u32 4294901760, %v1060_v37  ;;  %v2375_v32 = vsub.f32 %v1063_v28, %v2342_v3 }
 0x17d   :  { %v1823_v45 = vpop.eup %1822  ;;  %v2336_v0 = vand.u32 4294901760, %v1066_v30  ;;  %v1067_v17 = vmul.f32 %v1821_v21, %v2304_v51  ;;  %v1056_v51 = vmul.f32 %v1801_v38, %v2242_v26  ;;  %v2357_v58 = vsub.f32 %v1065_v55, %v2326_v62 }
 0x17e   :  { %v1825_v42 = vpop.eup %1824  ;;  %v1057_v14 = vmul.f32 %v1823_v45, %v2280_v5  ;;  %v2370_v26 = vand.u32 4294901760, %v1058_v31  ;;  %v2372_v5 = vand.u32 4294901760, %v1059_v2  ;;  %v2391_v40 = vsub.f32 %v1061_v59, %v2354_v27 }
 0x17f   :  { %v1827_v34 = vpop.eup %1826  ;;  %v2347_v50 = vsub.f32 %v1066_v30, %v2336_v0  ;;  %v2349_v39 = vand.u32 4294901760, %v1067_v17  ;;  %v1068_v12 = vmul.f32 %v1825_v42, %v2307_v54  ;;  %v1206_v13 = vand.u32 4294901760, %v2357_v58 }
 0x180   :  { %v1055_v54 = vmul.f32 %v1827_v34, %v2288_v19  ;;  %v2386_v19 = vand.u32 4294901760, %v1054_v7  ;;  %v2388_v4 = vand.u32 4294901760, %v1057_v14  ;;  %v2395_v9 = vand.u32 4294901760, %v1056_v51 }
 0x181   :  { %v2365_v46 = vsub.f32 %v1067_v17, %v2349_v39  ;;  %v2367_v48 = vand.u32 4294901760, %v1068_v12  ;;  %v1200_v16 = vand.u32 4294901760, %v2347_v50  ;;  %v2398_v10 = vsub.f32 %v1060_v37, %v2359_v36 }
 0x182   :  { %v1212_v49 = vand.u32 4294901760, %v2362_v43  ;;  %v2403_v53 = vand.u32 4294901760, %v1055_v54  ;;  %v2406_v44 = vsub.f32 %v1059_v2, %v2372_v5  ;;  %v1218_v38 = vand.u32 4294901760, %v2375_v32 }
 0x183   :  { %v1194_v47 = vand.u32 4294901760, %v2365_v46  ;;  %v2382_v20 = vsub.f32 %v1068_v12, %v2367_v48  ;;  %1095 = vmatprep.subr.mxu0 %v2367_v48  ;;  %v2414_v57 = vsub.f32 %v1058_v31, %v2370_v26  ;;  %v1201_v41 = vsub.f32 %v2347_v50, %v1200_v16 }
 0x184   :  { %1097 = vmatpush1.msra.mxu0 %v2349_v39  ;;  %v2428_v25 = vsub.f32 %v1057_v14, %v2388_v4  ;;  %v1230_v52 = vand.u32 4294901760, %v2391_v40  ;;  %v1207_v55 = vsub.f32 %v2357_v58, %v1206_v13  ;;  %v2436_v29 = vsub.f32 %v1056_v51, %v2395_v9 }
 0x185   :  { %1099 = vmatprep.subr.mxu0 %v2336_v0  ;;  %v1188_v22 = vand.u32 4294901760, %v2382_v20  ;;  %v1195_v33 = vsub.f32 %v2365_v46, %v1194_v47  ;;  %v1213_v56 = vsub.f32 %v2362_v43, %v1212_v49  ;;  %v1236_v60 = vand.u32 4294901760, %v2398_v10 }
 0x186   :  { %1101 = vmatpush1.msra.mxu0 %v2326_v62  ;;  %v2444_v30 = vsub.f32 %v1055_v54, %v2403_v53  ;;  %v1242_v21 = vand.u32 4294901760, %v2406_v44  ;;  %v1219_v45 = vsub.f32 %v2375_v32, %v1218_v38  ;;  %v2452_v37 = vsub.f32 %v1054_v7, %v2386_v19 }
 0x187   :  { %1103 = vmatprep.subr.mxu0 %v2334_v63  ;;  %v1189_v6 = vsub.f32 %v2382_v20, %v1188_v22  ;;  %v1196_v59 = vand.u32 4294901760, %v1195_v33  ;;  %v1202_v17 = vand.u32 4294901760, %v1201_v41  ;;  %v1225_v42 = vsub.f32 %v2378_v61, %v1224_v24 }
 0x188   :  { %1105 = vmatpush1.msra.mxu0 %v2342_v3  ;;  %v1248_v31 = vand.u32 4294901760, %v2414_v57  ;;  %v2461_v2 = vsub.f32 %v2323_v11, %v2425_v15  ;;  %v1254_v34 = vand.u32 4294901760, %v2428_v25  ;;  %v1208_v7 = vand.u32 4294901760, %v1207_v55 }
 0x189   :  { %1107 = vmatprep.subr.mxu0 %v2344_v8  ;;  %v1190_v28 = vand.u32 4294901760, %v1189_v6  ;;  %v1231_v12 = vsub.f32 %v2391_v40, %v1230_v52  ;;  %v1214_v51 = vand.u32 4294901760, %v1213_v56  ;;  %v1237_v14 = vsub.f32 %v2398_v10, %v1236_v60 }
 0x18a   :  { %1109 = vmatpush1.msra.mxu0 %v2354_v27  ;;  %v1260_v11 = vand.u32 4294901760, %v2436_v29  ;;  %v1266_v54 = vand.u32 4294901760, %v2444_v30  ;;  %v1220_v33 = vand.u32 4294901760, %v1219_v45  ;;  %v1243_v6 = vsub.f32 %v2406_v44, %v1242_v21 }
 0x18b   :  { %1111 = vmatprep.subr.mxu0 %v2359_v36  ;;  %1191 = vmatprep.subr.mxu1 %v1190_v28  ;;  %v1226_v41 = vand.u32 4294901760, %v1225_v42  ;;  %v1249_v55 = vsub.f32 %v2414_v57, %v1248_v31  ;;  %v1272_v28 = vand.u32 4294901760, %v2452_v37  ;;  %v1278_v56 = vand.u32 4294901760, %v2461_v2 }
 0x18c   :  { %1113 = vmatpush1.msra.mxu0 %v2372_v5  ;;  %1197 = vmatpush1.msra.mxu1 %v1196_v59  ;;  %v1232_v59 = vand.u32 4294901760, %v1231_v12  ;;  %v1163_v45 = vand.u32 4294901760, %v2331_v23  ;;  %v1238_v42 = vand.u32 4294901760, %v1237_v14  ;;  %v1267_v23 = vsub.f32 %v2444_v30, %v1266_v54 }
 0x18d   :  { %1115 = vmatprep.subr.mxu0 %v2370_v26  ;;  %1203 = vmatprep.subr.mxu1 %v1202_v17  ;;  %v1255_v17 = vsub.f32 %v2428_v25, %v1254_v34  ;;  %v1250_v12 = vand.u32 4294901760, %v1249_v55  ;;  %v1273_v14 = vsub.f32 %v2452_v37, %v1272_v28 }
 0x18e   :  { %1117 = vmatpush1.msra.mxu0 %v2388_v4  ;;  %1209 = vmatpush1.msra.mxu1 %v1208_v7  ;;  %v1261_v7 = vsub.f32 %v2436_v29, %v1260_v11 }
 0x18f   :  { %1119 = vmatprep.subr.mxu0 %v2395_v9  ;;  %1215 = vmatprep.subr.mxu1 %v1214_v51  ;;  %v1244_v51 = vand.u32 4294901760, %v1243_v6  ;;  %v1274_v55 = vand.u32 4294901760, %v1273_v14 }
 0x190   :  { %1121 = vmatpush1.msra.mxu0 %v2403_v53  ;;  %1221 = vmatpush1.msra.mxu1 %v1220_v33  ;;  %v1256_v33 = vand.u32 4294901760, %v1255_v17  ;;  %v1262_v6 = vand.u32 4294901760, %v1261_v7  ;;  %v2627_v17 = vmov 0.0  }
 0x191   :  { %1123 = vmatprep.subr.mxu0 %v2386_v19  ;;  %1227 = vmatprep.subr.mxu1 %v1226_v41  ;;  %v1279_v41 = vsub.f32 %v2461_v2, %v1278_v56 }
 0x192   :  { %1125 = vmatpush1.msra.mxu0 %v2425_v15  ;;  %1233 = vmatpush1.msra.mxu1 %v1232_v59  ;;  %v1268_v59 = vand.u32 4294901760, %v1267_v23 }
 0x193   :  { %1239 = vmatprep.subr.mxu1 %v1238_v42  ;;  %1340 = vmatprep.subr.mxu0 %v2382_v20 }
 0x194   :  { %1164 = vmatmul.mubr.f32.vlgmr.msra.gmra.mxu0 %v1163_v45  ;;  %1245 = vmatpush1.msra.mxu1 %v1244_v51  ;;  %v1280_v45 = vand.u32 4294901760, %v1279_v41 }
 0x195   :  { %1343 = vmatpush1.msra.mxu0 %v2365_v46  ;;  %1251 = vmatprep.subr.mxu1 %v1250_v12 }
 0x196   :  { %1346 = vmatprep.subr.mxu0 %v2347_v50  ;;  %1257 = vmatpush1.msra.mxu1 %v1256_v33 }
 0x197   :  { %1349 = vmatpush1.msra.mxu0 %v2357_v58  ;;  %1263 = vmatprep.subr.mxu1 %v1262_v6 }
 0x198   :  { %1352 = vmatprep.subr.mxu0 %v2362_v43  ;;  %1269 = vmatpush1.msra.mxu1 %v1268_v59 }
 0x199   :  { %1355 = vmatpush1.msra.mxu0 %v2375_v32  ;;  %1275 = vmatprep.subr.mxu1 %v1274_v55 }
 0x19a   :  { %1358 = vmatprep.subr.mxu0 %v2378_v61  ;;  %1281 = vmatpush1.msra.mxu1 %v1280_v45 }
 0x19b   :  { %1361 = vmatpush1.msra.mxu0 %v2391_v40  ;;  %1444 = vmatprep.subr.mxu1 %v2367_v48 }
 0x19c   :  { %1364 = vmatprep.subr.mxu0 %v2398_v10  ;;  %1316 = vmatmul.mubr.f32.vlgmr.msra.gmra.mxu1 %v2311_v1  ;;  %v1829_v10 = vld [vmem:[%s2608_s3 + $0x8] sm:$0xff] }
 0x19d   :  { %1367 = vmatpush1.msra.mxu0 %v2406_v44  ;;  %1446 = vmatpush1.msra.mxu1 %v2349_v39 }
 0x19e   :  { %1370 = vmatprep.subr.mxu0 %v2414_v57  ;;  %1448 = vmatprep.subr.mxu1 %v2336_v0 }
 0x19f   :  { %1373 = vmatpush1.msra.mxu0 %v2428_v25  ;;  %1450 = vmatpush1.msra.mxu1 %v2326_v62 }
 0x1a0   :  { %1376 = vmatprep.subr.mxu0 %v2436_v29  ;;  %1452 = vmatprep.subr.mxu1 %v2334_v63 }
 0x1a1   :  { %1379 = vmatpush1.msra.mxu0 %v2444_v30  ;;  %1454 = vmatpush1.msra.mxu1 %v2342_v3 }
 0x1a2   :  { %1382 = vmatprep.subr.mxu0 %v2452_v37  ;;  %1456 = vmatprep.subr.mxu1 %v2344_v8 }
 0x1a3   :  { %1385 = vmatpush1.msra.mxu0 %v2461_v2  ;;  %1458 = vmatpush1.msra.mxu1 %v2354_v27 }
 0x1a4   :  { %1418 = vmatprep.mubr.f32.mxu0 %v2627_v17  ;;  %1460 = vmatprep.subr.mxu1 %v2359_v36 }
 0x1a5   :  { %1536 = vmatprep.subr.mxu0 %v1188_v22  ;;  %1421 = vmatmul.mubr.f32.vlgmr.msra.gmra.mxu0 %v2314_v35 }
 0x1a6   :  { %1462 = vmatpush1.msra.mxu1 %v2372_v5  ;;  %1540 = vmatpush1.msra.mxu0 %v1194_v47 }
 0x1a7   :  { %1464 = vmatprep.subr.mxu1 %v2370_v26  ;;  %1544 = vmatprep.subr.mxu0 %v1200_v16 }
 0x1a8   :  { %1466 = vmatpush1.msra.mxu1 %v2388_v4  ;;  %1548 = vmatpush1.msra.mxu0 %v1206_v13 }
 0x1a9   :  { %1468 = vmatprep.subr.mxu1 %v2395_v9  ;;  %1552 = vmatprep.subr.mxu0 %v1212_v49 }
 0x1aa   :  { %1470 = vmatpush1.msra.mxu1 %v2403_v53  ;;  %1556 = vmatpush1.msra.mxu0 %v1218_v38 }
 0x1ab   :  { %1472 = vmatprep.subr.mxu1 %v2386_v19  ;;  %1560 = vmatprep.subr.mxu0 %v1224_v24 }
 0x1ac   :  { %1474 = vmatpush1.msra.mxu1 %v2425_v15  ;;  %1564 = vmatpush1.msra.mxu0 %v1230_v52 }
 0x1ad   :  { %1507 = vmatprep.mubr.f32.mxu1 %v2627_v17  ;;  %1568 = vmatprep.subr.mxu0 %v1236_v60 }
 0x1ae   :  { %1654 = vmatprep.subr.mxu1 %v2367_v48  ;;  %1511 = vmatmul.mubr.f32.vlgmr.msra.gmra.mxu1 %v1161_v18  ;;  %v1073_v18 = vpop.permute.xlu0 %1072 }
 0x1af   :  { %1572 = vmatpush1.msra.mxu0 %v1242_v21  ;;  %1656 = vmatpush1.msra.mxu1 %v2349_v39 }
 0x1b0   :  { %1576 = vmatprep.subr.mxu0 %v1248_v31  ;;  %1658 = vmatprep.subr.mxu1 %v2336_v0 }
 0x1b1   :  { %1580 = vmatpush1.msra.mxu0 %v1254_v34  ;;  %1660 = vmatpush1.msra.mxu1 %v2326_v62 }
 0x1b2   :  { %1584 = vmatprep.subr.mxu0 %v1260_v11  ;;  %1662 = vmatprep.subr.mxu1 %v2334_v63 }
 0x1b3   :  { %1588 = vmatpush1.msra.mxu0 %v1266_v54  ;;  %1664 = vmatpush1.msra.mxu1 %v2342_v3 }
 0x1b4   :  { %1592 = vmatprep.subr.mxu0 %v1272_v28  ;;  %1666 = vmatprep.subr.mxu1 %v2344_v8 }
 0x1b5   :  { %1596 = vmatpush1.msra.mxu0 %v1278_v56  ;;  %1629 = vmatprep.mubr.f32.mxu0 %v2627_v17 }
 0x1b6   :  { %1668 = vmatpush1.msra.mxu1 %v2354_v27  ;;  %1631 = vmatmul.mubr.f32.vlgmr.msra.gmra.mxu0 %v2311_v1 }
 0x1b7   :  { %1670 = vmatprep.subr.mxu1 %v2359_v36  ;;  %1717 = vmatprep.mubr.f32.mxu1 %v2627_v17 }
 0x1b8   :  { %1672 = vmatpush1.msra.mxu1 %v2372_v5 }
 0x1b9   :  { %1674 = vmatprep.subr.mxu1 %v2370_v26 }
 0x1ba   :  { %1676 = vmatpush1.msra.mxu1 %v2388_v4  ;;  %v1828_v4 = vld [vmem:[%s2608_s3] sm:$0xff] }
 0x1bb   :  { %1678 = vmatprep.subr.mxu1 %v2395_v9 }
 0x1bc   :  { %1680 = vmatpush1.msra.mxu1 %v2403_v53 }
 0x1bd   :  { %1682 = vmatprep.subr.mxu1 %v2386_v19 }
 0x1be   :  { %1684 = vmatpush1.msra.mxu1 %v2425_v15 }
 0x1bf   :  { %1719 = vmatmul.mubr.f32.vlgmr.msra.gmra.mxu1 %v2311_v1 }
 0x254   :  { %v1165_v35 = vpop.f32.mrf.mxu0 }
 0x255   :  { %v1166_v3 = vadd.f32 %v1165_v35, %v1073_v18 }
 0x256   :  { %v1167_v62 = vpop.f32.mrf.mxu0 }
 0x257   :  { %v1168_v50 = vadd.f32 %v1167_v62, %v1073_v18 }
 0x25c   :  { %v1317_v63 = vpop.f32.mrf.mxu1 }
 0x25d   :  { %v1318_v58 = vadd.f32 %v1317_v63, %v1166_v3 }
 0x25e   :  { %v1319_v8 = vpop.f32.mrf.mxu1 }
 0x25f   :  { %v1320_v43 = vadd.f32 %v1319_v8, %v1168_v50 }
 0x265   :  { %v1422_v0 = vpop.f32.mrf.mxu0 }
 0x266   :  { %v1423_v46 = vadd.f32 %v1422_v0, %v1318_v58 }
 0x267   :  { %v1424_v39 = vpop.f32.mrf.mxu0 }
 0x268   :  { %v1425_v26 = vadd.f32 %v1424_v39, %v1320_v43 }
 0x26e   :  { %v1512_v27 = vpop.f32.mrf.mxu1 }
 0x26f   :  { %v1513_v5 = vadd.f32 %v1512_v27, %v1423_v46 }
 0x270   :  { %v1514_v48 = vpop.f32.mrf.mxu1 }
 0x271   :  { %v1515_v61 = vadd.f32 %v1514_v48, %v1425_v26 }
 0x276   :  { %v1632_v36 = vpop.f32.mrf.mxu0 }
 0x277   :  { %v1633_v1 = vadd.f32 %v1632_v36, %v1513_v5 }
 0x278   :  { %v1634_v32 = vpop.f32.mrf.mxu0 }
 0x279   :  { %v1635_v20 = vadd.f32 %v1634_v32, %v1515_v61 }
 0x27f   :  { %v1720_v47 = vpop.f32.mrf.mxu1 }
 0x280   :  { %v1721_v16 = vadd.f32 %v1720_v47, %v1633_v1 }
 0x281   :  { %v1722_v19 = vpop.f32.mrf.mxu1 }
 0x282   :  { %v1725_v40 = vsub.f32 %v1721_v16, %v1828_v4  ;;  %v1723_v13 = vadd.f32 %v1722_v19, %v1635_v20 }
 0x284   :  { %v1727_v9 = vmul.f32 %v1725_v40, %v1725_v40  ;;  %v1726_v22 = vsub.f32 %v1723_v13, %v1829_v10 }
 0x286   :  { %1729 = vst [vmem:[%s2611_s6] sm:$0xff] %v1727_v9  ;;  %v1728_v49 = vmul.f32 %v1726_v22, %v1726_v22 }
 0x288   :  { %1730 = vst [vmem:[%s2611_s6 + $0x8] sm:$0xff] %v1728_v49 }
 0x289   :  { %1735 = vsyncpa [#allocation3], 1 }
 0x28a   :  { %1736 = vsyncpa [#allocation5], 1 }

</bundles_post_ra>
